<compile_context>
chip_gen: v5e
topology: v5e:2x2
jax: 0.10.0
libtpu: 0.0.40
codegen_flags: <defaults>
</compile_context>

<pallas_src>
import functools

import jax
import jax.numpy as jnp
from jax.experimental import pallas as pl
from jax.experimental.pallas import tpu as pltpu

_LANES = 128


def _layernorm_kernel(x_ref, w_ref, b_ref, o_ref, *, eps, feat_dim):
    """General path: one logical row per physical row (feat_dim >= 128-ish)."""
    x = x_ref[...].astype(jnp.float32)                     # (block_rows, feat_dim)
    n = jnp.float32(feat_dim)
    # Two-pass (centered) statistics in f32: numerically robust, and the extra
    # XLU reduction is hidden under the HBM DMA on this mem-bound kernel.
    mean = jnp.sum(x, axis=-1, keepdims=True) / n
    xc = x - mean
    var = jnp.sum(xc * xc, axis=-1, keepdims=True) / jnp.float32(feat_dim - 1)
    inv_std = jax.lax.rsqrt(var + jnp.float32(eps))
    y = xc * inv_std * w_ref[...] + b_ref[...]             # w/b already f32
    o_ref[...] = y.astype(o_ref.dtype)


def _layernorm_packed_kernel(x_ref, w_ref, b_ref, seg_ref, o_ref, *, eps,
                             feat_dim):
    """Lane-dense path for small feat_dim (feat_dim divides 128).

    Each physical row holds 128/feat_dim logical rows side by side.  The
    per-logical-row (segmented) sums are produced by a matmul with a constant
    block-diagonal ones matrix on the MXU, so every lane carries real data and
    every store is an unmasked, lane-dense vst.
    """
    x = x_ref[...].astype(jnp.float32)                     # (block_rows, 128)
    seg = seg_ref[...]                                     # (128, 128) block-diag ones
    n = jnp.float32(feat_dim)
    sums = jnp.dot(x, seg, preferred_element_type=jnp.float32)
    mean = sums / n                                        # broadcast within segment
    xc = x - mean
    ssq = jnp.dot(xc * xc, seg, preferred_element_type=jnp.float32)
    var = ssq / jnp.float32(feat_dim - 1)
    inv_std = jax.lax.rsqrt(var + jnp.float32(eps))
    y = xc * inv_std * w_ref[...] + b_ref[...]             # w/b tiled to 128 lanes, f32
    o_ref[...] = y.astype(o_ref.dtype)


def _choose_block_rows(rows, row_bytes, itemsize, *,
                       target_tile_bytes=2 * 1024 * 1024, min_steps=16):
    """Sublane-aligned row tile ~target_tile_bytes, with >= min_steps grid steps."""
    sublane = {4: 8, 2: 16, 1: 32}.get(itemsize, 8)
    br = max(sublane, (target_tile_bytes // max(row_bytes, 1)) // sublane * sublane)
    # Keep enough grid steps for pipelining + v7x dual-TC sharding.
    if rows // min_steps >= sublane:
        br = min(br, (rows // min_steps) // sublane * sublane)
    # Never exceed the sublane-rounded total row count.
    br = min(br, pl.cdiv(rows, sublane) * sublane)
    return max(sublane, br)


def layer_norm(x, w, b, *, eps=1e-5, block_rows=None):
    """LayerNorm over the last dim of `x`; w, b have shape (x.shape[-1],)."""
    orig_shape = x.shape
    feat_dim = orig_shape[-1]
    assert feat_dim > 1, "unbiased (N-1) variance requires feat_dim > 1"

    rows = 1
    for d in orig_shape[:-1]:
        rows *= d

    itemsize = jnp.dtype(x.dtype).itemsize
    x2 = x.reshape(rows, feat_dim)
    # Cast params to f32 once here (not per grid step inside the kernel).
    w32 = w.astype(jnp.float32).reshape(1, feat_dim)
    b32 = b.astype(jnp.float32).reshape(1, feat_dim)

    pack = _LANES // feat_dim if (feat_dim < _LANES and _LANES % feat_dim == 0) else 1

    if pack > 1:
        # ---- Lane-dense packed path (small feat_dim dividing 128) ----------
        rows_p = pl.cdiv(rows, pack)
        padded_rows = rows_p * pack
        if padded_rows != rows:
            # At most (pack - 1) zero rows; zeros are harmless (var=0 -> finite).
            x2 = jnp.pad(x2, ((0, padded_rows - rows), (0, 0)))
        xp = x2.reshape(rows_p, _LANES)
        w_t = jnp.tile(w32, (1, pack))                     # (1, 128)
        b_t = jnp.tile(b32, (1, pack))
        seg_ids = jnp.arange(_LANES, dtype=jnp.int32) // feat_dim
        seg = (seg_ids[:, None] == seg_ids[None, :]).astype(jnp.float32)

        if block_rows is None:
            block_rows = _choose_block_rows(rows_p, _LANES * itemsize, itemsize)
        grid = (pl.cdiv(rows_p, block_rows),)

        out = pl.pallas_call(
            functools.partial(_layernorm_packed_kernel, eps=eps,
                              feat_dim=feat_dim),
            out_shape=jax.ShapeDtypeStruct((rows_p, _LANES), x.dtype),
            grid_spec=pltpu.PrefetchScalarGridSpec(
                num_scalar_prefetch=0,
                grid=grid,
                in_specs=[
                    pl.BlockSpec((block_rows, _LANES), lambda i: (i, 0)),
                    pl.BlockSpec((1, _LANES), lambda i: (0, 0)),
                    pl.BlockSpec((1, _LANES), lambda i: (0, 0)),
                    pl.BlockSpec((_LANES, _LANES), lambda i: (0, 0)),
                ],
                out_specs=pl.BlockSpec((block_rows, _LANES), lambda i: (i, 0)),
            ),
            compiler_params=pltpu.CompilerParams(
                dimension_semantics=("parallel",),   # megacore / v7x dual-TC
            ),
        )(xp, w_t, b_t, seg)
        out = out.reshape(padded_rows, feat_dim)[:rows]
        return out.reshape(orig_shape)

    # ---- General path (feat_dim is its own lane extent) --------------------
    if block_rows is None:
        block_rows = _choose_block_rows(rows, feat_dim * itemsize, itemsize)
    grid = (pl.cdiv(rows, block_rows),)

    out = pl.pallas_call(
        functools.partial(_layernorm_kernel, eps=eps, feat_dim=feat_dim),
        out_shape=jax.ShapeDtypeStruct((rows, feat_dim), x.dtype),
        grid_spec=pltpu.PrefetchScalarGridSpec(
            num_scalar_prefetch=0,
            grid=grid,
            in_specs=[
                pl.BlockSpec((block_rows, feat_dim), lambda i: (i, 0)),
                pl.BlockSpec((1, feat_dim), lambda i: (0, 0)),
                pl.BlockSpec((1, feat_dim), lambda i: (0, 0)),
            ],
            out_specs=pl.BlockSpec((block_rows, feat_dim), lambda i: (i, 0)),
        ),
        compiler_params=pltpu.CompilerParams(
            dimension_semantics=("parallel",),
        ),
    )(x2, w32, b32)
    return out.reshape(orig_shape)


def _layer_norm_ref(x, w, b, eps=1e-5):
    # Pure-JAX reference matching the PyTorch module exactly (unbiased var).
    x32 = x.astype(jnp.float32)
    mean = jnp.mean(x32, axis=-1, keepdims=True)
    var = jnp.sum((x32 - mean) ** 2, axis=-1, keepdims=True) / (x.shape[-1] - 1)
    xn = (x32 - mean) / jnp.sqrt(var + eps)
    return (xn * w.astype(jnp.float32) + b.astype(jnp.float32)).astype(x.dtype)


if __name__ == "__main__":
    key = jax.random.PRNGKey(0)
    k0, k1, k2, k3, k4 = jax.random.split(key, 5)

    # ---- Case 1: module shape (batch=2, seq=8, hidden=32) -> packed path ----
    batch, seq, hidden = 2, 8, 32
    w = 1.0 + 0.1 * jax.random.normal(k3, (hidden,), dtype=jnp.float32)
    b = 0.1 * jax.random.normal(k4, (hidden,), dtype=jnp.float32)
    # Add a DC offset to exercise the centered (two-pass) variance numerics.
    x = jax.random.normal(k0, (batch, seq, hidden), dtype=jnp.float32) + 2.0
    out = jax.block_until_ready(layer_norm(x, w, b, eps=1e-5))
    ref = _layer_norm_ref(x, w, b, eps=1e-5)
    assert out.shape == x.shape
    assert jnp.allclose(out, ref, atol=2e-5, rtol=2e-5), "case 1 mismatch"

    # ---- Case 2: ragged row count (3*5=15 rows) -> packed path w/ row pad ---
    x2 = jax.random.normal(k1, (3, 5, hidden), dtype=jnp.float32) + 2.0
    out2 = jax.block_until_ready(layer_norm(x2, w, b, eps=1e-5))
    ref2 = _layer_norm_ref(x2, w, b, eps=1e-5)
    assert out2.shape == x2.shape
    assert jnp.allclose(out2, ref2, atol=2e-5, rtol=2e-5), "case 2 mismatch"

    # ---- Case 3: hidden=256 -> general (lane-dense, multiple of 128) path ---
    hidden3 = 256
    w3 = jnp.ones((hidden3,), dtype=jnp.float32)
    b3 = jnp.zeros((hidden3,), dtype=jnp.float32)
    x3 = jax.random.normal(k2, (4, 16, hidden3), dtype=jnp.float32) + 2.0
    out3 = jax.block_until_ready(layer_norm(x3, w3, b3, eps=1e-5))
    ref3 = _layer_norm_ref(x3, w3, b3, eps=1e-5)
    assert out3.shape == x3.shape
    assert jnp.allclose(out3, ref3, atol=2e-5, rtol=2e-5), "case 3 mismatch"

    print("KERNEL_OK")
</pallas_src>

<mosaic_0001>
module attributes {stable_mosaic.version = 11 : i64} {
  func.func @_layernorm_packed_kernel(%arg0: i32, %arg1: memref<8x128xf32, #tpu.memory_space<vmem>>, %arg2: memref<1x128xf32, #tpu.memory_space<vmem>>, %arg3: memref<1x128xf32, #tpu.memory_space<vmem>>, %arg4: memref<128x128xf32, #tpu.memory_space<vmem>>, %arg5: memref<8x128xf32, #tpu.memory_space<vmem>>) attributes {dimension_semantics = [#tpu.dimension_semantics<parallel>], iteration_bounds = array<i64: 1>, scalar_prefetch = 0 : i64, scratch_operands = 0 : i64, tpu.core_type = #tpu.core_type<tc>, window_params = [{transform_indices = @transform_0, window_bounds = array<i64: 8, 128>}, {pipeline_mode = #tpu.pipeline_mode<synchronous>, transform_indices = @transform_1, window_bounds = array<i64: 1, 128>}, {pipeline_mode = #tpu.pipeline_mode<synchronous>, transform_indices = @transform_2, window_bounds = array<i64: 1, 128>}, {pipeline_mode = #tpu.pipeline_mode<synchronous>, transform_indices = @transform_3, window_bounds = array<i64: 128, 128>}, {transform_indices = @transform_4, window_bounds = array<i64: 8, 128>}]} {
    %c0 = arith.constant 0 : index
    %c0_0 = arith.constant 0 : index
    %0 = vector.load %arg1[%c0, %c0_0] : memref<8x128xf32, #tpu.memory_space<vmem>>, vector<8x128xf32>
    %c0_1 = arith.constant 0 : index
    %c0_2 = arith.constant 0 : index
    %1 = vector.load %arg4[%c0_1, %c0_2] : memref<128x128xf32, #tpu.memory_space<vmem>>, vector<128x128xf32>
    %cst = arith.constant dense<0.000000e+00> : vector<8x128xf32>
    %2 = tpu.matmul %0, %1, %cst {dimension_numbers = #tpu.dot_dimension_numbers<[1], [0], [0], [1], [0, 0, 1, 1], [], []>} : vector<8x128xf32>, vector<128x128xf32>, vector<8x128xf32> -> vector<8x128xf32>
    %cst_3 = arith.constant 3.200000e+01 : f32
    %3 = vector.broadcast %cst_3 : f32 to vector<8x128xf32>
    %4 = arith.divf %2, %3 : vector<8x128xf32>
    %5 = arith.subf %0, %4 : vector<8x128xf32>
    %6 = arith.mulf %5, %5 : vector<8x128xf32>
    %cst_4 = arith.constant dense<0.000000e+00> : vector<8x128xf32>
    %7 = tpu.matmul %6, %1, %cst_4 {dimension_numbers = #tpu.dot_dimension_numbers<[1], [0], [0], [1], [0, 0, 1, 1], [], []>} : vector<8x128xf32>, vector<128x128xf32>, vector<8x128xf32> -> vector<8x128xf32>
    %cst_5 = arith.constant 3.100000e+01 : f32
    %8 = vector.broadcast %cst_5 : f32 to vector<8x128xf32>
    %9 = arith.divf %7, %8 : vector<8x128xf32>
    %cst_6 = arith.constant 9.99999974E-6 : f32
    %10 = vector.broadcast %cst_6 : f32 to vector<8x128xf32>
    %11 = arith.addf %9, %10 : vector<8x128xf32>
    %12 = math.rsqrt %11 : vector<8x128xf32>
    %13 = arith.mulf %5, %12 : vector<8x128xf32>
    %c0_7 = arith.constant 0 : index
    %c0_8 = arith.constant 0 : index
    %14 = vector.load %arg2[%c0_7, %c0_8] : memref<1x128xf32, #tpu.memory_space<vmem>>, vector<1x128xf32>
    %15 = vector.broadcast %14 : vector<1x128xf32> to vector<8x128xf32>
    %16 = arith.mulf %13, %15 : vector<8x128xf32>
    %c0_9 = arith.constant 0 : index
    %c0_10 = arith.constant 0 : index
    %17 = vector.load %arg3[%c0_9, %c0_10] : memref<1x128xf32, #tpu.memory_space<vmem>>, vector<1x128xf32>
    %18 = vector.broadcast %17 : vector<1x128xf32> to vector<8x128xf32>
    %19 = arith.addf %16, %18 : vector<8x128xf32>
    %c0_11 = arith.constant 0 : index
    %c0_12 = arith.constant 0 : index
    %20 = vector.load %arg5[%c0_11, %c0_12] : memref<8x128xf32, #tpu.memory_space<vmem>>, vector<8x128xf32>
    tpu.vector_store %arg5[%c0_11, %c0_12], %19 {strides = array<i32>} : memref<8x128xf32, #tpu.memory_space<vmem>>, vector<8x128xf32>,
    return
  }
  func.func @transform_0(%arg0: i32) -> (i32, i32) {
    %c0_i32 = arith.constant 0 : i32
    %c0_i32_0 = arith.constant 0 : i32
    return %arg0, %c0_i32 : i32, i32
  }
  func.func @transform_1(%arg0: i32) -> (i32, i32) {
    %c0_i32 = arith.constant 0 : i32
    %c0_i32_0 = arith.constant 0 : i32
    %c0_i32_1 = arith.constant 0 : i32
    return %c0_i32, %c0_i32_0 : i32, i32
  }
  func.func @transform_2(%arg0: i32) -> (i32, i32) {
    %c0_i32 = arith.constant 0 : i32
    %c0_i32_0 = arith.constant 0 : i32
    %c0_i32_1 = arith.constant 0 : i32
    return %c0_i32, %c0_i32_0 : i32, i32
  }
  func.func @transform_3(%arg0: i32) -> (i32, i32) {
    %c0_i32 = arith.constant 0 : i32
    %c0_i32_0 = arith.constant 0 : i32
    %c0_i32_1 = arith.constant 0 : i32
    return %c0_i32, %c0_i32_0 : i32, i32
  }
  func.func @transform_4(%arg0: i32) -> (i32, i32) {
    %c0_i32 = arith.constant 0 : i32
    %c0_i32_0 = arith.constant 0 : i32
    return %arg0, %c0_i32 : i32, i32
  }
}

</mosaic_0001>

<bundles_post_ra>
// kernel: tpu_custom_call.1
= control target key start
LH: loop header
LB: loop body
LE: loop exit
PB: predicated region body
PF: predicated region fallthrough
CT: control target
= control target key end

     0   :  { %9 = vsyncpa [#allocation3], 0  ;;  %s357_s0 = inlined_call_operand.hbm [shape: f32[4,128], index: 0, kind: input, shape index: {}]   ;;  %s358_s1 = inlined_call_operand.hbm [shape: f32[1,128], index: 1, kind: input, shape index: {}]   ;;  %s359_s2 = inlined_call_operand.vmem [shape: f32[1,128], index: 2, kind: input, shape index: {}]   ;;  %s360_s3 = inlined_call_operand.hbm [shape: f32[128,128], index: 3, kind: input, shape index: {}]   ;;  %s361_s4 = inlined_call_operand.hbm [shape: f32[4,128], index: 4, kind: output, shape index: {}]  }
   0x1   :  { %10 = vsyncpa [#allocation6], 0 }
   0x2   :  { %11 = vsyncpa [#allocation4], 0  ;;  %s30_s17 = sshll.u32 %s358_s1, 4  ;;  %s31_s17 = int_to_ptr.hbm [resolvable:$true] %s30_s17 }
   0x3   :  { %15 = vsyncadd [#allocation3], 64  ;;  %s301_s18 = smov [#allocation5]   ;;  %s16_s22 = sshll.u32 %s357_s0, 4  ;;  %s17_s22 = int_to_ptr.hbm [resolvable:$true] %s16_s22 }
   0x4   :  { %s32_s19 = sshll.u32 %s301_s18, 4  ;;  %s302_s23 = smov [#allocation2]   ;;  %s33_s19 = int_to_ptr.vmem [resolvable:$true] %s32_s19 }
   0x5   :  { %35 = dma.hbm_to_vmem [thread:$0]  %s31_s17, 16, %s33_s19, [#allocation6]  }
   0x6   :  { %s18_s24 = sshll.u32 %s302_s23, 4  ;;  %s303_s25 = smov 64   ;;  %s19_s24 = int_to_ptr.vmem [resolvable:$true] %s18_s24 }
   0x7   :  { %s304_s26 = smov 4   ;;  %s42_s28 = sshll.u32 %s360_s3, 4  ;;  %s43_s28 = int_to_ptr.hbm [resolvable:$true] %s42_s28 }
   0x8   :  { %24 = dma.hbm_to_vmem [thread:$0]  %s17_s22, 64, %s19_s24, [#allocation3], %s303_s25, %s303_s25, %s304_s26  }
   0x9   :  { %s305_s29 = smov [#allocation7]   ;;  %s306_s0 = smov 128  }
   0xa   :  { %s44_s30 = sshll.u32 %s305_s29, 4  ;;  %s307_s5 = smov 8   ;;  %s45_s30 = int_to_ptr.vmem [resolvable:$true] %s44_s30 }
   0xb   :  { %50 = dma.hbm_to_vmem [thread:$0]  %s43_s28, 2048, %s45_s30, [#allocation6], %s306_s0, %s306_s0, %s307_s5  }
   0xc   :  { %295 = dma.done.wait [#allocation3], 128  }
   0xd   :  { %296 = vsyncadd [#allocation3], 4294967168 }
   0xe   :  { %297 = dma.done.wait [#allocation6], 2064  }
   0xf   :  { %298 = vsyncadd [#allocation6], 4294965232  ;;  %v79_v0 = vld [vmem:[#allocation7 + $0x78] sm:$0xff]  ;;  %v78_v1 = vld [vmem:[#allocation7 + $0x70] sm:$0xff]  ;;  %v308_v17 = vmov 32.0   ;;  %v309_v28 = vmov 31.0  }
  0x10   :  { %80 = vmatpush.msra.mxu0 %v79_v0  ;;  %110 = vmatpush.msra.mxu1 %v79_v0  ;;  %v77_v2 = vld [vmem:[#allocation7 + $0x68] sm:$0xff]  ;;  %v76_v3 = vld [vmem:[#allocation7 + $0x60] sm:$0xff]  ;;  %v75_v4 = vld [vmem:[#allocation7 + $0x58] sm:$0xff]  ;;  %193 = vrcp.f32 %v308_v17 }
  0x11   :  { %v74_v5 = vld [vmem:[#allocation7 + $0x50] sm:$0xff]  ;;  %v73_v6 = vld [vmem:[#allocation7 + $0x48] sm:$0xff]  ;;  %v72_v7 = vld [vmem:[#allocation7 + $0x40] sm:$0xff]  ;;  %195 = vrcp.f32 %v309_v28 }
  0x12   :  { %81 = vmatpush.msra.mxu0 %v78_v1  ;;  %111 = vmatpush.msra.mxu1 %v78_v1  ;;  %v71_v8 = vld [vmem:[#allocation7 + $0x38] sm:$0xff]  ;;  %v70_v9 = vld [vmem:[#allocation7 + $0x30] sm:$0xff]  ;;  %v69_v10 = vld [vmem:[#allocation7 + $0x28] sm:$0xff] }
  0x13   :  { %v68_v11 = vld [vmem:[#allocation7 + $0x20] sm:$0xff]  ;;  %v67_v12 = vld [vmem:[#allocation7 + $0x18] sm:$0xff]  ;;  %v66_v13 = vld [vmem:[#allocation7 + $0x10] sm:$0xff] }
  0x14   :  { %82 = vmatpush.msra.mxu0 %v77_v2  ;;  %112 = vmatpush.msra.mxu1 %v77_v2  ;;  %v65_v14 = vld [vmem:[#allocation7 + $0x8] sm:$0xff]  ;;  %v64_v15 = vld [vmem:[#allocation7] sm:$0xff]  ;;  %v63_v16 = vld [vmem:[#allocation2] sm:$0xff] }
  0x15   :  { %v191_v44 = vld [vmem:[#allocation5] ss:$0 sm:$0xff]  ;;  %v192_v47 = vld [vmem:[%s359_s2] ss:$0 sm:$0xff] }
  0x16   :  { %83 = vmatpush.msra.mxu0 %v76_v3  ;;  %113 = vmatpush.msra.mxu1 %v76_v3  ;;  %v194_v18 = vpop.eup %193 }
  0x17   :  { %v101_v19 = vmul.f32 32.0, %v194_v18  ;;  %vm105_vm0 = vweird.f32 %v194_v18  ;;  %v196_v29 = vpop.eup %195 }
  0x18   :  { %84 = vmatpush.msra.mxu0 %v75_v4  ;;  %114 = vmatpush.msra.mxu1 %v75_v4  ;;  %v131_v30 = vmul.f32 31.0, %v196_v29  ;;  %vm135_vm1 = vweird.f32 %v196_v29 }
  0x19   :  { %v102_v20 = vsub.f32 1.0, %v101_v19 }
  0x1a   :  { %85 = vmatpush.msra.mxu0 %v74_v5  ;;  %115 = vmatpush.msra.mxu1 %v74_v5  ;;  %v132_v31 = vsub.f32 1.0, %v131_v30 }
  0x1b   :  { %v103_v21 = vmul.f32 %v194_v18, %v102_v20 }
  0x1c   :  { %86 = vmatpush.msra.mxu0 %v73_v6  ;;  %116 = vmatpush.msra.mxu1 %v73_v6  ;;  %v133_v32 = vmul.f32 %v196_v29, %v132_v31 }
  0x1d   :  { %v104_v22 = vadd.f32 %v194_v18, %v103_v21 }
  0x1e   :  { %87 = vmatpush.msra.mxu0 %v72_v7  ;;  %117 = vmatpush.msra.mxu1 %v72_v7  ;;  %v134_v33 = vadd.f32 %v196_v29, %v133_v32 }
  0x1f   :  { %v106_v23 = vsel %vm105_vm0, %v194_v18, %v104_v22 }
  0x20   :  { %88 = vmatpush.msra.mxu0 %v71_v8  ;;  %118 = vmatpush.msra.mxu1 %v71_v8  ;;  %v136_v34 = vsel %vm135_vm1, %v196_v29, %v134_v33 }
  0x22   :  { %89 = vmatpush.msra.mxu0 %v70_v9  ;;  %119 = vmatpush.msra.mxu1 %v70_v9 }
  0x24   :  { %90 = vmatpush.msra.mxu0 %v69_v10  ;;  %120 = vmatpush.msra.mxu1 %v69_v10 }
  0x26   :  { %91 = vmatpush.msra.mxu0 %v68_v11  ;;  %121 = vmatpush.msra.mxu1 %v68_v11 }
  0x28   :  { %92 = vmatpush.msra.mxu0 %v67_v12  ;;  %122 = vmatpush.msra.mxu1 %v67_v12 }
  0x2a   :  { %93 = vmatpush.msra.mxu0 %v66_v13  ;;  %123 = vmatpush.msra.mxu1 %v66_v13 }
  0x2c   :  { %94 = vmatpush.msra.mxu0 %v65_v14  ;;  %124 = vmatpush.msra.mxu1 %v65_v14 }
  0x2e   :  { %95 = vmatpush.msra.mxu0 %v64_v15  ;;  %125 = vmatpush.msra.mxu1 %v64_v15 }
  0x2f   :  { %96 = vmatmul.f32.vlgmr.msra.gmra.mxu0 %v63_v16 }
  0xac   :  { %v97_v24 = vpop.f32.mrf.mxu0 }
  0xad   :  { %v107_v25 = vmul.f32 %v106_v23, %v97_v24 }
  0xaf   :  { %v108_v26 = vsub.f32 %v63_v16, %v107_v25 }
  0xb1   :  { %v109_v27 = vmul.f32 %v108_v26, %v108_v26 }
  0xb3   :  { %126 = vmatmul.f32.vlgmr.msra.gmra.mxu1 %v109_v27 }
 0x130   :  { %v127_v35 = vpop.f32.mrf.mxu1 }
 0x131   :  { %v137_v36 = vmul.f32 %v136_v34, %v127_v35 }
 0x133   :  { %v138_v37 = vadd.f32 1e-05, %v137_v36 }
 0x135   :  { %197 = vrsqrt.f32 %v138_v37  ;;  %vm145_vm3 = vweird.f32 %v138_v37 }
 0x13b   :  { %v198_v38 = vpop.eup %197 }
 0x13c   :  { %v140_v39 = vmul.f32 %v198_v38, %v138_v37  ;;  %vm146_vm2 = vweird.f32 %v198_v38 }
 0x13d   :  { %vm147_vm4 = vmor %vm145_vm3, %vm146_vm2 }
 0x13e   :  { %v141_v40 = vmul.f32 %v198_v38, %v140_v39 }
 0x140   :  { %v142_v41 = vmul.f32 0.5, %v141_v40 }
 0x142   :  { %v143_v42 = vsub.f32 1.5, %v142_v41 }
 0x144   :  { %v144_v43 = vmul.f32 %v198_v38, %v143_v42 }
 0x146   :  { %v148_v45 = vsel %vm147_vm4, %v198_v38, %v144_v43 }
 0x147   :  { %v149_v46 = vmul.f32 %v148_v45, %v108_v26 }
 0x149   :  { %v154_v48 = vmul.f32 %v191_v44, %v149_v46 }
 0x14b   :  { %v159_v49 = vadd.f32 %v192_v47, %v154_v48 }
 0x14d   :  { %160 = vst [vmem:[#allocation8] sm:$0xff] %v159_v49 }
 0x14e   :  { %164 = vsyncadd [#allocation4], 64  ;;  %s167_s9 = sshll.u32 %s361_s4, 4  ;;  %s310_s10 = smov [#allocation8]   ;;  %s168_s9 = int_to_ptr.hbm [resolvable:$true] %s167_s9 }
 0x14f   :  { %s165_s11 = sshll.u32 %s310_s10, 4  ;;  %s166_s11 = int_to_ptr.vmem [resolvable:$true] %s165_s11 }
 0x150   :  { %173 = dma.vmem_to_hbm [thread:$0]  %s166_s11, 64, %s168_s9, [#allocation4], %s303_s25, %s303_s25, %s304_s26  }
 0x151   :  { %299 = dma.done.wait [#allocation4], 128  }
 0x152   :  { %300 = vsyncadd [#allocation4], 4294967168 }
 0x153   :  { %178 = vsyncpa [#allocation3], 1 }
 0x154   :  { %179 = vsyncpa [#allocation6], 1 }
 0x155   :  { %180 = vsyncpa [#allocation4], 1 }

</bundles_post_ra>
